<compile_context>
chip_gen: v7x
topology: tpu7x:2x2x1
jax: 0.10.0
libtpu: 0.0.40
codegen_flags: <defaults>
</compile_context>

<pallas_src>
import functools
import math

import numpy as np
import jax
import jax.numpy as jnp
from jax.experimental import pallas as pl
from jax.experimental.pallas import tpu as pltpu

F32 = jnp.float32


# ----------------------------------------- Pallas kernel -----------------------------------------
def _convnorm_kernel(x_ref, w_ref, b_ref, o_ref, slab_ref, *,
                     batch, cin, length, kw, pad, dilation, lout):
    """Whole ConvNorm forward in one invocation.

    x_ref   : (B, Cin, L)       f32 input
    w_ref   : (Cout, K*Cin)     pre-reshaped / pre-cast conv weight
    b_ref   : (Cout, 1)         f32 bias column
    o_ref   : (B, Cout, Lout)   f32 output (length on the lane dimension)
    slab_ref: (K*Cin, B*Lout)   im2col scratch in compute dtype
    """
    cdt = slab_ref.dtype

    # ---- build the im2col slab: tap k occupies rows [k*Cin, (k+1)*Cin) ----------------
    # All offsets/extents are static Python ints -> static slices, no per-call jnp.pad.
    for k in range(kw):
        off = k * dilation - pad              # source column offset of this tap
        lo = max(0, -off)                     # leading zero columns (left halo)
        hi = min(lout, length - off)          # first trailing zero column (right halo)
        r0, r1 = k * cin, (k + 1) * cin
        for b in range(batch):
            c0 = b * lout
            if lo > 0:                        # zero ONLY the halo slices, not the whole slab
                slab_ref[r0:r1, c0:c0 + lo] = jnp.zeros((cin, lo), cdt)
            if hi < lout:
                slab_ref[r0:r1, c0 + hi:c0 + lout] = jnp.zeros((cin, lout - hi), cdt)
            if hi > lo:                       # interior copy + single cast to compute dtype
                slab_ref[r0:r1, c0 + lo:c0 + hi] = x_ref[b, :, off + lo:off + hi].astype(cdt)

    # ---- one MXU matmul over the full slab, f32 accumulation ---------------------------
    y = jnp.dot(w_ref[...], slab_ref[...], preferred_element_type=jnp.float32)
    y = y + b_ref[...]                        # bias broadcast (Cout, 1) over B*Lout lanes

    # ---- per-batch lane-dense stores (Lout = multiple of 128 in the intended use) ------
    for b in range(batch):
        o_ref[b] = y[:, b * lout:(b + 1) * lout].astype(o_ref.dtype)


@functools.lru_cache(maxsize=None)
def _convnorm_call(batch, cin, length, cout, kw, pad, dilation, lout, compute_dtype_name):
    cdt = jnp.dtype(compute_dtype_name)
    kern = functools.partial(_convnorm_kernel, batch=batch, cin=cin, length=length,
                             kw=kw, pad=pad, dilation=dilation, lout=lout)
    return pl.pallas_call(
        kern,
        out_shape=jax.ShapeDtypeStruct((batch, cout, lout), F32),
        grid=(1,),                                                    # batch folded onto lanes
        in_specs=[
            pl.BlockSpec((batch, cin, length), lambda i: (0, 0, 0)),  # input, whole array
            pl.BlockSpec((cout, kw * cin), lambda i: (0, 0)),         # (Cout, K*Cin) weight
            pl.BlockSpec((cout, 1), lambda i: (0, 0)),                # bias column
        ],
        out_specs=pl.BlockSpec((batch, cout, lout), lambda i: (0, 0, 0)),
        scratch_shapes=[pltpu.VMEM((kw * cin, batch * lout), cdt)],   # im2col slab
        compiler_params=pltpu.CompilerParams(dimension_semantics=("arbitrary",)),
    )


# ----------------------------------------- module wrapper -----------------------------------------
_GAINS = {'linear': 1.0, 'relu': math.sqrt(2.0), 'tanh': 5.0 / 3.0, 'sigmoid': 1.0}


class ConvNorm:
    """JAX/Pallas port of the PyTorch ConvNorm module (eval forward)."""

    def __init__(self, key, in_channels, out_channels, kernel_size=1, stride=1,
                 padding=None, dilation=1, bias=True, w_init_gain='linear',
                 compute_dtype=jnp.bfloat16):
        if padding is None:
            assert kernel_size % 2 == 1
            padding = int(dilation * (kernel_size - 1) / 2)
        assert stride == 1  # TODO(synk): stride > 1 not implemented (ConvNorm default is 1)

        self.cin = in_channels
        self.cout = out_channels
        self.kernel_size = kernel_size
        self.padding = padding
        self.dilation = dilation
        self.compute_dtype_name = jnp.dtype(compute_dtype).name

        # xavier_uniform_ with calculate_gain(w_init_gain), torch weight layout (Cout, Cin, K).
        gain = _GAINS[w_init_gain]
        fan_in = in_channels * kernel_size
        fan_out = out_channels * kernel_size
        bound = gain * math.sqrt(6.0 / (fan_in + fan_out))
        wkey, bkey = jax.random.split(key)
        self.w_torch = jax.random.uniform(
            wkey, (out_channels, in_channels, kernel_size),
            minval=-bound, maxval=bound, dtype=F32)
        # Hoisted layout plumbing: (Cout,Cin,K) -> (Cout,K,Cin) -> (Cout,K*Cin), cast ONCE
        # to the MXU compute dtype (bf16 default).  Row index = k*Cin + c matches slab rows.
        self.w_mat = jnp.reshape(
            jnp.transpose(self.w_torch, (0, 2, 1)),
            (out_channels, kernel_size * in_channels)).astype(compute_dtype)
        if bias:
            bb = 1.0 / math.sqrt(fan_in)
            self.b = jax.random.uniform(bkey, (out_channels,), minval=-bb, maxval=bb, dtype=F32)
        else:
            self.b = jnp.zeros((out_channels,), F32)
        self.b_col = self.b.reshape(out_channels, 1)          # hoisted reshape

    def __call__(self, signal):
        """signal: (B, Cin, L) -> (B, Cout, Lout)."""
        batch, cin, length = signal.shape
        assert cin == self.cin
        lout = length + 2 * self.padding - self.dilation * (self.kernel_size - 1)
        call = _convnorm_call(batch, cin, length, self.cout, self.kernel_size,
                              self.padding, self.dilation, lout, self.compute_dtype_name)
        return call(signal.astype(F32), self.w_mat, self.b_col)


# ----------------------------------------- host reference -----------------------------------------
def _convnorm_ref(x, w_torch, b, padding, dilation):
    x64 = np.asarray(x, np.float64)
    w64 = np.asarray(w_torch, np.float64)
    b64 = np.asarray(b, np.float64)
    bsz, cin, L = x64.shape
    cout, _, kw = w64.shape
    xp = np.pad(x64, ((0, 0), (0, 0), (padding, padding)))
    lout = L + 2 * padding - dilation * (kw - 1)
    out = np.zeros((bsz, cout, lout), np.float64)
    for k in range(kw):
        off = k * dilation
        out += np.einsum('oc,bcl->bol', w64[:, :, k], xp[:, :, off:off + lout])
    return out + b64[None, :, None]


# ------------------------------------------------ main ------------------------------------------------
if __name__ == "__main__":
    key = jax.random.PRNGKey(0)
    kx, k1, k2, k3 = jax.random.split(key, 4)

    B, Cin, Cout, L = 2, 8, 16, 128          # L = 128 -> lane-dense stores, B*L = 256-wide MXU RHS
    x = jax.random.normal(kx, (B, Cin, L), dtype=F32)

    configs = [
        dict(kernel_size=1, dilation=1),     # ConvNorm defaults (padding -> 0)
        dict(kernel_size=5, dilation=1),     # 'same' padding = 2
        dict(kernel_size=3, dilation=2),     # dilated, 'same' padding = 2
    ]
    conv_keys = [k1, k2, k3]

    ok = True
    for cfg, ck in zip(configs, conv_keys):
        conv = ConvNorm(ck, Cin, Cout, **cfg)
        y = conv(x)
        jax.block_until_ready(y)
        ref = _convnorm_ref(x, conv.w_torch, conv.b, conv.padding, conv.dilation)
        np.testing.assert_allclose(np.asarray(y, np.float64), ref, rtol=2e-2, atol=2e-2)
        ok = ok and (y.shape == (B, Cout, L))

    if ok:
        print("KERNEL_OK")
</pallas_src>

<mosaic_0001>
module attributes {stable_mosaic.version = 11 : i64} {
  func.func @_convnorm_kernel(%arg0: i32, %arg1: memref<2x8x128xf32, #tpu.memory_space<vmem>>, %arg2: memref<16x8xbf16, #tpu.memory_space<vmem>>, %arg3: memref<16x1xf32, #tpu.memory_space<vmem>>, %arg4: memref<2x16x128xf32, #tpu.memory_space<vmem>>, %arg5: memref<8x256xbf16, #tpu.memory_space<vmem>>) attributes {dimension_semantics = [#tpu.dimension_semantics<arbitrary>], iteration_bounds = array<i64: 1>, scalar_prefetch = 0 : i64, scratch_operands = 1 : i64, tpu.core_type = #tpu.core_type<tc>, window_params = [{pipeline_mode = #tpu.pipeline_mode<synchronous>, transform_indices = @transform_0, window_bounds = array<i64: 2, 8, 128>}, {pipeline_mode = #tpu.pipeline_mode<synchronous>, transform_indices = @transform_1, window_bounds = array<i64: 16, 8>}, {pipeline_mode = #tpu.pipeline_mode<synchronous>, transform_indices = @transform_2, window_bounds = array<i64: 16, 1>}, {pipeline_mode = #tpu.pipeline_mode<synchronous>, transform_indices = @transform_3, window_bounds = array<i64: 2, 16, 128>}]} {
    %c0 = arith.constant 0 : index
    %c0_0 = arith.constant 0 : index
    %c0_1 = arith.constant 0 : index
    %0 = vector.load %arg1[%c0, %c0_0, %c0_1] : memref<2x8x128xf32, #tpu.memory_space<vmem>>, vector<1x8x128xf32>
    %1 = vector.shape_cast %0 : vector<1x8x128xf32> to vector<8x128xf32>
    %2 = arith.truncf %1 : vector<8x128xf32> to vector<8x128xbf16>
    %c0_2 = arith.constant 0 : index
    %c0_3 = arith.constant 0 : index
    %3 = vector.load %arg5[%c0_2, %c0_3] : memref<8x256xbf16, #tpu.memory_space<vmem>>, vector<8x128xbf16>
    tpu.vector_store %arg5[%c0_2, %c0_3], %2 {strides = array<i32>} : memref<8x256xbf16, #tpu.memory_space<vmem>>, vector<8x128xbf16>,
    %c1 = arith.constant 1 : index
    %c0_4 = arith.constant 0 : index
    %c0_5 = arith.constant 0 : index
    %4 = vector.load %arg1[%c1, %c0_4, %c0_5] : memref<2x8x128xf32, #tpu.memory_space<vmem>>, vector<1x8x128xf32>
    %5 = vector.shape_cast %4 : vector<1x8x128xf32> to vector<8x128xf32>
    %6 = arith.truncf %5 : vector<8x128xf32> to vector<8x128xbf16>
    %c0_6 = arith.constant 0 : index
    %c128 = arith.constant 128 : index
    %7 = vector.load %arg5[%c0_6, %c128] : memref<8x256xbf16, #tpu.memory_space<vmem>>, vector<8x128xbf16>
    tpu.vector_store %arg5[%c0_6, %c128], %6 {strides = array<i32>} : memref<8x256xbf16, #tpu.memory_space<vmem>>, vector<8x128xbf16>,
    %c0_7 = arith.constant 0 : index
    %c0_8 = arith.constant 0 : index
    %8 = vector.load %arg2[%c0_7, %c0_8] : memref<16x8xbf16, #tpu.memory_space<vmem>>, vector<16x8xbf16>
    %c0_9 = arith.constant 0 : index
    %c0_10 = arith.constant 0 : index
    %9 = vector.load %arg5[%c0_9, %c0_10] : memref<8x256xbf16, #tpu.memory_space<vmem>>, vector<8x256xbf16>
    %cst = arith.constant dense<0.000000e+00> : vector<16x256xf32>
    %10 = tpu.matmul %8, %9, %cst {dimension_numbers = #tpu.dot_dimension_numbers<[1], [0], [0], [1], [0, 0, 1, 1], [], []>} : vector<16x8xbf16>, vector<8x256xbf16>, vector<16x256xf32> -> vector<16x256xf32>
    %c0_11 = arith.constant 0 : index
    %c0_12 = arith.constant 0 : index
    %11 = vector.load %arg3[%c0_11, %c0_12] : memref<16x1xf32, #tpu.memory_space<vmem>>, vector<16x1xf32>
    %12 = vector.broadcast %11 : vector<16x1xf32> to vector<16x256xf32>
    %13 = arith.addf %10, %12 : vector<16x256xf32>
    %14 = vector.extract_strided_slice %13 {offsets = [0, 0], sizes = [16, 128], strides = [1, 1]} : vector<16x256xf32> to vector<16x128xf32>
    %c0_13 = arith.constant 0 : index
    %c0_14 = arith.constant 0 : index
    %c0_15 = arith.constant 0 : index
    %15 = vector.load %arg4[%c0_13, %c0_14, %c0_15] : memref<2x16x128xf32, #tpu.memory_space<vmem>>, vector<1x16x128xf32>
    %16 = vector.shape_cast %15 : vector<1x16x128xf32> to vector<16x128xf32>
    %17 = vector.shape_cast %14 : vector<16x128xf32> to vector<1x16x128xf32>
    tpu.vector_store %arg4[%c0_13, %c0_14, %c0_15], %17 {strides = array<i32>} : memref<2x16x128xf32, #tpu.memory_space<vmem>>, vector<1x16x128xf32>,
    %18 = vector.extract_strided_slice %13 {offsets = [0, 128], sizes = [16, 128], strides = [1, 1]} : vector<16x256xf32> to vector<16x128xf32>
    %c1_16 = arith.constant 1 : index
    %c0_17 = arith.constant 0 : index
    %c0_18 = arith.constant 0 : index
    %19 = vector.load %arg4[%c1_16, %c0_17, %c0_18] : memref<2x16x128xf32, #tpu.memory_space<vmem>>, vector<1x16x128xf32>
    %20 = vector.shape_cast %19 : vector<1x16x128xf32> to vector<16x128xf32>
    %21 = vector.shape_cast %18 : vector<16x128xf32> to vector<1x16x128xf32>
    tpu.vector_store %arg4[%c1_16, %c0_17, %c0_18], %21 {strides = array<i32>} : memref<2x16x128xf32, #tpu.memory_space<vmem>>, vector<1x16x128xf32>,
    return
  }
  func.func @transform_0(%arg0: i32) -> (i32, i32, i32) {
    %c0_i32 = arith.constant 0 : i32
    %c0_i32_0 = arith.constant 0 : i32
    %c0_i32_1 = arith.constant 0 : i32
    %c0_i32_2 = arith.constant 0 : i32
    return %c0_i32, %c0_i32_0, %c0_i32_1 : i32, i32, i32
  }
  func.func @transform_1(%arg0: i32) -> (i32, i32) {
    %c0_i32 = arith.constant 0 : i32
    %c0_i32_0 = arith.constant 0 : i32
    %c0_i32_1 = arith.constant 0 : i32
    return %c0_i32, %c0_i32_0 : i32, i32
  }
  func.func @transform_2(%arg0: i32) -> (i32, i32) {
    %c0_i32 = arith.constant 0 : i32
    %c0_i32_0 = arith.constant 0 : i32
    %c0_i32_1 = arith.constant 0 : i32
    return %c0_i32, %c0_i32_0 : i32, i32
  }
  func.func @transform_3(%arg0: i32) -> (i32, i32, i32) {
    %c0_i32 = arith.constant 0 : i32
    %c0_i32_0 = arith.constant 0 : i32
    %c0_i32_1 = arith.constant 0 : i32
    %c0_i32_2 = arith.constant 0 : i32
    return %c0_i32, %c0_i32_0, %c0_i32_1 : i32, i32, i32
  }
}

</mosaic_0001>

<bundles_post_ra>
// kernel: tpu_custom_call.1
= control target key start
LH: loop header
LB: loop body
LE: loop exit
PB: predicated region body
PF: predicated region fallthrough
CT: control target
= control target key end

     0   :  { %vm52_vm0 = vcmask 1043456   ;;  %v166_v4 = vmov 0   ;;  %s217_s0 = inlined_call_operand.vmem [shape: f32[2,8,128], index: 0, kind: input, shape index: {}]   ;;  %s218_s1 = inlined_call_operand.vmem [shape: bf16[16,8], index: 1, kind: input, shape index: {}]   ;;  %s219_s2 = inlined_call_operand.vmem [shape: f32[16,1], index: 2, kind: input, shape index: {}]   ;;  %s220_s3 = inlined_call_operand.hbm [shape: f32[2,16,128], index: 3, kind: output, shape index: {}]  }
   0x1   :  { %v123_v0 = vld [vmem:[%s217_s0 + $0x8] sm:$0xff]  ;;  %v16_v1 = vld [vmem:[%s217_s0] sm:$0xff]  ;;  %91 = vmatprep.mubr.bf16.mxu0 %v166_v4  ;;  %140 = vset.pattern.permute.xlu0 %v166_v4 }
   0x2   :  { %v135_v2 = vpack.c.bf16 %v123_v0, %v123_v0  ;;  %v134_v3 = vpack.c.bf16 %v16_v1, %v16_v1  ;;  %v26_v5 = vld [vmem:[%s219_s2] sm:$0xff] }
   0x3   :  { %30 = vperm.xlu0 %140, %v26_v5  }
   0x4   :  { %8 = vsyncpa [#allocation4], 0  ;;  %127 = vmatprep.subr.msk.bf16.mxu0 %vm52_vm0, %v135_v2  ;;  %v54_v6 = vsel %vm52_vm0, %v134_v3, 0  ;;  %v141_v7 = vld [vmem:[%s218_s1] sm:$0xff]   ;;  %v27_v8 = vld [vmem:[%s219_s2 + $0x8] sm:$0xff]  ;;  %vm48_vm1 = vcmask 64512  }
   0x5   :  { %60 = vmatpush1.bf16.msra.mxu0 %v54_v6  ;;  %s167_s0 = smov [#allocation3]  }
   0x6   :  { %s112_s22 = sshll.u32 %s167_s0, 4  ;;  %s113_s22 = int_to_ptr.vmem [resolvable:$true] %s112_s22 }
   0x7   :  { %35 = vperm.xlu0 %140, %v27_v8   ;;  %s142_s1 = scalar_lea.vmem %s113_s22, 512  ;;  %p147_p1 = scmp.lt.s32.totalorder %s113_s22, %s113_s22 }
   0x8   :  { %128 = vmatmul.mubr.msk.bf16.vlgmr.msra.gmra.mrb[0].mxu0 %vm48_vm1, %v141_v7  ;;  %p143_p0 = scmp.ne.s32.totalorder %s113_s22, %s142_s1  ;;  %p148_p2 = scmp.lt.s32.totalorder %s142_s1, %s142_s1 }
   0xa   :  { %p149_p3 = por %p148_p2, %p147_p1 }
   0xc   :  { %p150_p4 = pnand %p149_p3, %p143_p0 }
  0x82   :  { %v31_v9 = vpop.permute.xlu0 %30 }
  0x86   :  { %v36_v13 = vpop.permute.xlu0 %35 }
  0xdb   :  { %v93_v10 = vpop.f32.mrb[0].mxu0 }
  0xdc   :  { %v94_v11 = vadd.f32 %v93_v10, %v31_v9  ;;  %v95_v12 = vpop.f32.mrb[1].mxu0 }
  0xdd   :  { %v96_v14 = vadd.f32 %v95_v12, %v31_v9  ;;  %v97_v15 = vpop.f32.mrb[2].mxu0 }
  0xde   :  { %102 = vst [vmem:[#allocation3] sm:$0xff] %v94_v11  ;;  %v98_v16 = vadd.f32 %v97_v15, %v36_v13  ;;  %v99_v17 = vpop.f32.mrb[3].mxu0 }
  0xdf   :  { %105 = vst [vmem:[#allocation3 + $0x10] sm:$0xff] %v96_v14  ;;  %v100_v18 = vadd.f32 %v99_v17, %v36_v13 }
  0xe0   :  { %103 = vst [vmem:[#allocation3 + $0x8] sm:$0xff] %v98_v16 }
  0xe1   :  { %106 = vst [vmem:[#allocation3 + $0x18] sm:$0xff] %v100_v18 }
  0xe2   :  { %153 = shalt.err (!%p150_p4)
}
  0xe3   :  { %s154_s24 = scalar_lea.hbm %s220_s3, 512 }
  0xe4   :  { %p155_p5 = scmp.ne.s32.totalorder %s220_s3, %s154_s24  ;;  %p158_p6 = scmp.lt.u32.totalorder %s154_s24, %s220_s3 }
  0xe6   :  { %p160_p7 = pnand %p158_p6, %p155_p5 }
  0xe8   :  { %163 = shalt.err (!%p160_p7)
}
  0xe9   :  { %s168_s29 = smov 128   ;;  %s169_s30 = smov 8  }
  0xea   :  { %118 = dma.vmem_to_hbm [thread:$0]  %s113_s22, 512, %s220_s3, [#allocation4], %s168_s29, %s168_s29, %s169_s30  }
  0xeb   :  { %164 = dma.done.wait [#allocation4], 512  }
  0xec   :  { %165 = vsyncadd [#allocation4], 4294966784 }
  0xed   :  { %122 = vsyncpa [#allocation4], 1 }

</bundles_post_ra>
